<compile_context>
chip_gen: v7x
topology: tpu7x:2x2x1
jax: 0.10.0
libtpu: 0.0.40
codegen_flags: <defaults>
</compile_context>

<pallas_src>
import functools

import jax
import jax.numpy as jnp
from jax.experimental import pallas as pl
from jax.experimental.pallas import tpu as pltpu


def mlp_kernel(x_ref, w1_ref, b1_ref, w2_ref, b2_ref, o_ref):
    # x_ref : (TB, in_f)      f32   (streamed per grid step)
    # w1_ref: (in_f, hidden)  f32   (resident)
    # b1_ref: (1, hidden)     f32   (resident)
    # w2_ref: (hidden, out)   f32   (resident)
    # b2_ref: (1, out)        f32   (resident)
    # o_ref : (TB, out)       f32
    x = x_ref[...]

    # Linear 1 on the MXU, f32 accumulation.
    h = jnp.dot(x, w1_ref[...], preferred_element_type=jnp.float32)
    # Bias + ReLU on the VPU.
    h = jnp.maximum(h + b1_ref[...], 0.0)

    # Linear 2 on the MXU; out stays narrow (no lane padding) so the HBM
    # writeback is minimal. Store is masked (vst.msk) but we're HBM-bound.
    y = jnp.dot(h, w2_ref[...], preferred_element_type=jnp.float32)
    o_ref[...] = (y + b2_ref[...]).astype(o_ref.dtype)


def _cdiv(a, b):
    return (a + b - 1) // b


def _round_up(n, m):
    return ((n + m - 1) // m) * m


@functools.partial(jax.jit, static_argnames=("max_tb",))
def mlp_forward(x, w1, b1, w2, b2, *, max_tb=4096):
    """relu(x @ w1.T + b1) @ w2.T + b2 with PyTorch-convention weights."""
    B, in_f = x.shape
    hidden = w1.shape[0]
    out = w2.shape[0]

    # Batch tile: large enough to amortize per-grid-step overhead, multiple of
    # 8 (f32 sublane), capped at ~ceil(B/2) so the "parallel" grid keeps >= 2
    # steps whenever B allows (lets v7x shard the batch over both TensorCores).
    tb = max(8, min(max_tb, _round_up(_cdiv(B, 2), 8)))
    grid = (_cdiv(B, tb),)

    # One-time layout work on the tiny weights only: transpose to
    # (in_features, out_features) so the kernel feeds the MXU directly.
    w1_t = w1.T.astype(jnp.float32)                    # (in_f, hidden)
    b1_2d = b1.reshape(1, hidden).astype(jnp.float32)  # (1, hidden)
    w2_t = w2.T.astype(jnp.float32)                    # (hidden, out)
    b2_2d = b2.reshape(1, out).astype(jnp.float32)     # (1, out)

    y = pl.pallas_call(
        mlp_kernel,
        out_shape=jax.ShapeDtypeStruct((B, out), jnp.float32),
        grid_spec=pltpu.PrefetchScalarGridSpec(
            num_scalar_prefetch=0,
            grid=grid,
            in_specs=[
                pl.BlockSpec((tb, in_f), lambda i: (i, 0)),      # x tile (streamed)
                pl.BlockSpec((in_f, hidden), lambda i: (0, 0)),  # w1^T (resident)
                pl.BlockSpec((1, hidden), lambda i: (0, 0)),     # b1   (resident)
                pl.BlockSpec((hidden, out), lambda i: (0, 0)),   # w2^T (resident)
                pl.BlockSpec((1, out), lambda i: (0, 0)),        # b2   (resident)
            ],
            out_specs=pl.BlockSpec((tb, out), lambda i: (i, 0)),
        ),
        compiler_params=pltpu.CompilerParams(
            dimension_semantics=("parallel",),
            vmem_limit_bytes=32 * 1024 * 1024,
        ),
    )(x.astype(jnp.float32), w1_t, b1_2d, w2_t, b2_2d)

    return y.astype(x.dtype)


if __name__ == "__main__":
    boardsize, hiddensize, outsize = 16, 32, 4
    batch = 2

    key = jax.random.PRNGKey(0)
    kx, kw1, kb1, kw2, kb2 = jax.random.split(key, 5)

    # Deterministic parameter init: weights ~ N(0, 0.05) as in the module's __init__.
    w1 = 0.05 * jax.random.normal(kw1, (hiddensize, boardsize), jnp.float32)
    b1 = 0.05 * jax.random.normal(kb1, (hiddensize,), jnp.float32)
    w2 = 0.05 * jax.random.normal(kw2, (outsize, hiddensize), jnp.float32)
    b2 = 0.05 * jax.random.normal(kb2, (outsize,), jnp.float32)

    x = jax.random.normal(kx, (batch, boardsize), jnp.float32)

    out = mlp_forward(x, w1, b1, w2, b2)
    jax.block_until_ready(out)
    assert out.shape == (batch, outsize)

    # Full-f32 reference (highest-precision XLA matmuls). The kernel keeps all
    # operands and accumulation in f32, so a tight tolerance applies.
    hp = jax.lax.Precision.HIGHEST
    h_ref = jnp.maximum(jnp.dot(x, w1.T, precision=hp) + b1, 0.0)
    ref = jnp.dot(h_ref, w2.T, precision=hp) + b2
    assert jnp.allclose(out, ref, atol=2e-3, rtol=2e-3), (out, ref)

    print("KERNEL_OK")
</pallas_src>

<mosaic_0001>
module attributes {stable_mosaic.version = 11 : i64} {
  func.func @mlp_kernel(%arg0: i32, %arg1: memref<8x16xf32, #tpu.memory_space<vmem>>, %arg2: memref<16x32xf32, #tpu.memory_space<vmem>>, %arg3: memref<1x32xf32, #tpu.memory_space<vmem>>, %arg4: memref<32x4xf32, #tpu.memory_space<vmem>>, %arg5: memref<1x4xf32, #tpu.memory_space<vmem>>, %arg6: memref<8x4xf32, #tpu.memory_space<vmem>>) attributes {dimension_semantics = [#tpu.dimension_semantics<parallel>], iteration_bounds = array<i64: 1>, scalar_prefetch = 0 : i64, scratch_operands = 0 : i64, tpu.core_type = #tpu.core_type<tc>, window_params = [{transform_indices = @transform_0, window_bounds = array<i64: 8, 16>}, {pipeline_mode = #tpu.pipeline_mode<synchronous>, transform_indices = @transform_1, window_bounds = array<i64: 16, 32>}, {pipeline_mode = #tpu.pipeline_mode<synchronous>, transform_indices = @transform_2, window_bounds = array<i64: 1, 32>}, {pipeline_mode = #tpu.pipeline_mode<synchronous>, transform_indices = @transform_3, window_bounds = array<i64: 32, 4>}, {pipeline_mode = #tpu.pipeline_mode<synchronous>, transform_indices = @transform_4, window_bounds = array<i64: 1, 4>}, {transform_indices = @transform_5, window_bounds = array<i64: 8, 4>}]} {
    %c0 = arith.constant 0 : index
    %c0_0 = arith.constant 0 : index
    %0 = vector.load %arg1[%c0, %c0_0] : memref<8x16xf32, #tpu.memory_space<vmem>>, vector<8x16xf32>
    %c0_1 = arith.constant 0 : index
    %c0_2 = arith.constant 0 : index
    %1 = vector.load %arg2[%c0_1, %c0_2] : memref<16x32xf32, #tpu.memory_space<vmem>>, vector<16x32xf32>
    %cst = arith.constant dense<0.000000e+00> : vector<8x32xf32>
    %2 = tpu.matmul %0, %1, %cst {dimension_numbers = #tpu.dot_dimension_numbers<[1], [0], [0], [1], [0, 0, 1, 1], [], []>} : vector<8x16xf32>, vector<16x32xf32>, vector<8x32xf32> -> vector<8x32xf32>
    %c0_3 = arith.constant 0 : index
    %c0_4 = arith.constant 0 : index
    %3 = vector.load %arg3[%c0_3, %c0_4] : memref<1x32xf32, #tpu.memory_space<vmem>>, vector<1x32xf32>
    %4 = vector.broadcast %3 : vector<1x32xf32> to vector<8x32xf32>
    %5 = arith.addf %2, %4 : vector<8x32xf32>
    %cst_5 = arith.constant 0.000000e+00 : f32
    %6 = vector.broadcast %cst_5 : f32 to vector<8x32xf32>
    %7 = arith.maximumf %5, %6 : vector<8x32xf32>
    %c0_6 = arith.constant 0 : index
    %c0_7 = arith.constant 0 : index
    %8 = vector.load %arg4[%c0_6, %c0_7] : memref<32x4xf32, #tpu.memory_space<vmem>>, vector<32x4xf32>
    %cst_8 = arith.constant dense<0.000000e+00> : vector<8x4xf32>
    %9 = tpu.matmul %7, %8, %cst_8 {dimension_numbers = #tpu.dot_dimension_numbers<[1], [0], [0], [1], [0, 0, 1, 1], [], []>} : vector<8x32xf32>, vector<32x4xf32>, vector<8x4xf32> -> vector<8x4xf32>
    %c0_9 = arith.constant 0 : index
    %c0_10 = arith.constant 0 : index
    %10 = vector.load %arg5[%c0_9, %c0_10] : memref<1x4xf32, #tpu.memory_space<vmem>>, vector<1x4xf32>
    %11 = vector.broadcast %10 : vector<1x4xf32> to vector<8x4xf32>
    %12 = arith.addf %9, %11 : vector<8x4xf32>
    %c0_11 = arith.constant 0 : index
    %c0_12 = arith.constant 0 : index
    %13 = vector.load %arg6[%c0_11, %c0_12] : memref<8x4xf32, #tpu.memory_space<vmem>>, vector<8x4xf32>
    tpu.vector_store %arg6[%c0_11, %c0_12], %12 {strides = array<i32>} : memref<8x4xf32, #tpu.memory_space<vmem>>, vector<8x4xf32>,
    return
  }
  func.func @transform_0(%arg0: i32) -> (i32, i32) {
    %c0_i32 = arith.constant 0 : i32
    %c0_i32_0 = arith.constant 0 : i32
    return %arg0, %c0_i32 : i32, i32
  }
  func.func @transform_1(%arg0: i32) -> (i32, i32) {
    %c0_i32 = arith.constant 0 : i32
    %c0_i32_0 = arith.constant 0 : i32
    %c0_i32_1 = arith.constant 0 : i32
    return %c0_i32, %c0_i32_0 : i32, i32
  }
  func.func @transform_2(%arg0: i32) -> (i32, i32) {
    %c0_i32 = arith.constant 0 : i32
    %c0_i32_0 = arith.constant 0 : i32
    %c0_i32_1 = arith.constant 0 : i32
    return %c0_i32, %c0_i32_0 : i32, i32
  }
  func.func @transform_3(%arg0: i32) -> (i32, i32) {
    %c0_i32 = arith.constant 0 : i32
    %c0_i32_0 = arith.constant 0 : i32
    %c0_i32_1 = arith.constant 0 : i32
    return %c0_i32, %c0_i32_0 : i32, i32
  }
  func.func @transform_4(%arg0: i32) -> (i32, i32) {
    %c0_i32 = arith.constant 0 : i32
    %c0_i32_0 = arith.constant 0 : i32
    %c0_i32_1 = arith.constant 0 : i32
    return %c0_i32, %c0_i32_0 : i32, i32
  }
  func.func @transform_5(%arg0: i32) -> (i32, i32) {
    %c0_i32 = arith.constant 0 : i32
    %c0_i32_0 = arith.constant 0 : i32
    return %arg0, %c0_i32 : i32, i32
  }
}

</mosaic_0001>

<bundles_post_ra>
// kernel: mlp_forward.1
= control target key start
LH: loop header
LB: loop body
LE: loop exit
PB: predicated region body
PF: predicated region fallthrough
CT: control target
= control target key end

     0   :  { %10 = vsyncpa [#allocation3], 0  ;;  %v278_v2 = vmov 0.0|0.0   ;;  %vm279_vm0 = vmmov 0   ;;  %v280_v6 = vmov 0.0   ;;  %vm31_vm1 = vcmask 130048   ;;  %s353_s0 = inlined_call_operand.vmem [shape: f32[2,16], index: 0, kind: input, shape index: {}]   ;;  %s354_s1 = inlined_call_operand.vmem [shape: f32[16,32], index: 1, kind: input, shape index: {}]   ;;  %s355_s2 = inlined_call_operand.vmem [shape: f32[1,32], index: 2, kind: input, shape index: {}]   ;;  %s356_s3 = inlined_call_operand.vmem [shape: f32[32,4], index: 3, kind: input, shape index: {}]   ;;  %s357_s4 = inlined_call_operand.vmem [shape: f32[1,4], index: 4, kind: input, shape index: {}]   ;;  %s358_s5 = inlined_call_operand.hbm [shape: f32[2,4], index: 5, kind: output, shape index: {}]  }
   0x1   :  { %v22_v0 = vld [vmem:[%s354_s1] sm:$0xff]  ;;  %v23_v1 = vld [vmem:[%s354_s1 + $0x8] sm:$0xff]  ;;  %239 = vmatprep.subr.bf16.mxu0 %v278_v2  ;;  %242 = vmatprep.subr.bf16.mxu1 %v278_v2  ;;  %v108_v9 = vld [vmem:[%s356_s3 + $0x10] sm:$0xff]  ;;  %vm117_vm2 = vcmask 261120   ;;  %vm191_vm3 = vcmask 31744  }
   0x2   :  { %v240_v3 = vpack.c.bf16 %v23_v1, %v22_v0  ;;  %v106_v4 = vld [vmem:[%s356_s3] sm:$0xff]  ;;  %v107_v5 = vld [vmem:[%s356_s3 + $0x8] sm:$0xff]  ;;  %225 = vmatprep.mubr.msk.f32.mxu0 %vm279_vm0, %v280_v6  ;;  %236 = vmatprep.mubr.msk.f32.mxu1 %vm279_vm0, %v280_v6  ;;  %v109_v10 = vld [vmem:[%s356_s3 + $0x18] sm:$0xff] }
   0x3   :  { %v243_v7 = vpack.c.bf16 %v107_v5, %v106_v4  ;;  %v21_v8 = vld [vmem:[%s353_s0] sm:$0xff]  ;;  %v246_v11 = vpack.c.bf16 %v109_v10, %v108_v9 }
   0x4   :  { %241 = vmatpush3.bf16.msra.mxu0 %v240_v3  ;;  %v209_v12 = vld [vmem:[%s355_s2] ss:$0 sm:$0xff] }
   0x5   :  { %244 = vmatpush3.bf16.msra.mxu1 %v243_v7  ;;  %v211_v17 = vld [vmem:[%s357_s4] ss:$0 sm:$0xff] }
   0x6   :  { %245 = vmatprep.subr.bf16.mxu1 %v278_v2 }
   0x7   :  { %226 = vmatmul.mubr.msk.f32.vlgmr.msra.gmra.mrb[0].mxu0 %vm31_vm1, %v21_v8 }
   0x9   :  { %247 = vmatpush3.bf16.msra.mxu1 %v246_v11 }
  0xda   :  { %v101_v13 = vpop.f32.mrb[0].mxu0 }
  0xdb   :  { %v102_v14 = vadd.f32 %v209_v12, %v101_v13  ;;  %v227_v15 = vpop.f32.mrb[1].mxu0 }
  0xdd   :  { %v105_v16 = vmax.f32 %v102_v14, 0.0 }
  0xdf   :  { %237 = vmatmul.mubr.msk.f32.vlgmr.msra.gmra.mrb[0].mxu1 %vm117_vm2, %v105_v16 }
 0x1b2   :  { %v187_v18 = vpop.f32.mrb[0].mxu1 }
 0x1b3   :  { %v188_v19 = vadd.f32 %v211_v17, %v187_v18  ;;  %v238_v20 = vpop.f32.mrb[1].mxu1 }
 0x1b5   :  { %192 = vst.msk [vmem:[#allocation2] sm:$0xff] %vm191_vm3, %v188_v19 }
 0x1b6   :  { %197 = vsyncadd [#allocation3], 96  ;;  %s281_s3 = smov [#allocation2]  }
 0x1b7   :  { %s198_s9 = sshll.u32 %s281_s3, 4  ;;  %s199_s9 = int_to_ptr.vmem [resolvable:$true] %s198_s9 }
 0x1b8   :  { %s254_s2 = scalar_lea.vmem %s199_s9, 32  ;;  %s258_s10 = scalar_lea.vmem %s199_s9, 128 }
 0x1b9   :  { %p255_p0 = scmp.ne.s32.totalorder %s199_s9, %s254_s2  ;;  %p259_p1 = scmp.lt.s32.totalorder %s199_s9, %s199_s9 }
 0x1ba   :  { %p260_p2 = scmp.lt.s32.totalorder %s258_s10, %s254_s2 }
 0x1bc   :  { %p261_p3 = por %p260_p2, %p259_p1 }
 0x1be   :  { %p262_p4 = pnand %p261_p3, %p255_p0 }
 0x1c0   :  { %265 = shalt.err (!%p262_p4)
}
 0x1c1   :  { %s266_s4 = scalar_lea.hbm %s358_s5, 32 }
 0x1c2   :  { %p267_p5 = scmp.ne.s32.totalorder %s358_s5, %s266_s4  ;;  %p270_p6 = scmp.lt.u32.totalorder %s266_s4, %s358_s5 }
 0x1c4   :  { %p272_p7 = pnand %p270_p6, %p267_p5 }
 0x1c6   :  { %275 = shalt.err (!%p272_p7)
}
 0x1c7   :  { %s282_s17 = smov 32   ;;  %s283_s18 = smov 2  }
 0x1c8   :  { %204 = dma.vmem_to_hbm [thread:$0]  %s199_s9, 32, %s358_s5, [#allocation3], %s282_s17, %s282_s17, %s283_s18  }
 0x1c9   :  { %276 = dma.done.wait [#allocation3], 128  }
 0x1ca   :  { %277 = vsyncadd [#allocation3], 4294967168 }
 0x1cb   :  { %208 = vsyncpa [#allocation3], 1 }

</bundles_post_ra>
